<compile_context>
chip_gen: v6e
topology: v6e:2x2x1
jax: 0.10.0
libtpu: 0.0.40
codegen_flags: <defaults>
</compile_context>

<pallas_src>
import jax
import jax.numpy as jnp
from jax.experimental import pallas as pl
from jax.experimental.pallas import tpu as pltpu


# ---------------------------------------------------------------------------
# Decoder time-step kernel: attention + LSTM cell. Emits hidden states only.
# ---------------------------------------------------------------------------
def _decoder_step_kernel(yemb_ref, enc_ref, waT_ref, wih_e_ref, wih_c_ref,
                         whh_ref, b_ref, h0_ref, c0_ref,
                         h_out_ref, h_scr, c_scr):
    t = pl.program_id(0)
    H = h_scr.shape[1]

    @pl.when(t == 0)
    def _():
        h_scr[...] = h0_ref[...]
        c_scr[...] = c0_ref[...]

    h = h_scr[...]                           # [B, H]
    c = c_scr[...]                           # [B, H]
    enc = enc_ref[...]                       # [B, T_enc, H]
    B = h.shape[0]

    # ---- multiplicative attention (loop-invariant enc@Wa hoisted away) ----
    # scores[b, t] = sum_h enc[b, t, h] * (h @ Wa^T)[b, h]
    q = jnp.dot(h, waT_ref[...], preferred_element_type=jnp.float32)   # [B, H]
    q3 = q[:, None, :]                                                 # [B, 1, H]
    scores = jnp.einsum('bsh,bth->bst', q3, enc,
                        preferred_element_type=jnp.float32)            # [B, 1, T_enc]
    m = jnp.max(scores, axis=2, keepdims=True)
    e = jnp.exp(scores - m)
    aw = e * pl.reciprocal(jnp.sum(e, axis=2, keepdims=True), approx=False)
    ctx = jnp.einsum('bst,bth->bsh', aw, enc,
                     preferred_element_type=jnp.float32).reshape(B, H)  # [B, H]

    # ---- LSTM cell (PyTorch gate order i, f, g, o); no concat: split matmuls ----
    gates = (jnp.dot(yemb_ref[...], wih_e_ref[...],
                     preferred_element_type=jnp.float32)
             + jnp.dot(ctx, wih_c_ref[...], preferred_element_type=jnp.float32)
             + jnp.dot(h, whh_ref[...], preferred_element_type=jnp.float32)
             + b_ref[...])                                              # [B, 4H]
    i_g = jax.nn.sigmoid(gates[:, 0 * H:1 * H])
    f_g = jax.nn.sigmoid(gates[:, 1 * H:2 * H])
    g_g = jnp.tanh(gates[:, 2 * H:3 * H])
    o_g = jax.nn.sigmoid(gates[:, 3 * H:4 * H])
    c_new = f_g * c + i_g * g_g
    h_new = o_g * jnp.tanh(c_new)
    h_scr[...] = h_new
    c_scr[...] = c_new
    h_out_ref[...] = h_new.astype(h_out_ref.dtype)


# ---------------------------------------------------------------------------
# Hoisted output projection: [T_dec*B, H] @ [H, V_pad] + b, lane-dense tiles.
# ---------------------------------------------------------------------------
def _proj_kernel(h_ref, w_ref, b_ref, o_ref, acc_ref):
    @pl.when(pl.program_id(2) == 0)
    def _():
        acc_ref[...] = jnp.zeros_like(acc_ref)
    acc_ref[...] += jnp.dot(h_ref[...], w_ref[...],
                            preferred_element_type=jnp.float32)
    @pl.when(pl.program_id(2) == pl.num_programs(2) - 1)
    def _():
        o_ref[...] = (acc_ref[...] + b_ref[...]).astype(o_ref.dtype)


def _round_up(x, m):
    return (x + m - 1) // m * m


def _pick_tile(dim, candidates):
    for c in candidates:
        if dim % c == 0:
            return c
    return dim


def _output_projection(h_flat, wfc_T, bfc):
    """h_flat: [M, H]; wfc_T: [H, V]; bfc: [1, V] -> logits [M, V]."""
    M, H = h_flat.shape
    V = wfc_T.shape[1]
    M_pad = _round_up(M, 8)
    V_pad = _round_up(V, 128)          # lane-dense output stores

    h_p = jnp.pad(h_flat, ((0, M_pad - M), (0, 0))) if M_pad != M else h_flat
    w_p = jnp.pad(wfc_T, ((0, 0), (0, V_pad - V))) if V_pad != V else wfc_T
    b_p = jnp.pad(bfc, ((0, 0), (0, V_pad - V))) if V_pad != V else bfc

    tm = _pick_tile(M_pad, (256, 128, 64, 32, 16, 8))
    tn = _pick_tile(V_pad, (512, 256, 128))
    tk = _pick_tile(H, (512, 256, 128)) if H % 128 == 0 else H

    out = pl.pallas_call(
        _proj_kernel,
        out_shape=jax.ShapeDtypeStruct((M_pad, V_pad), jnp.float32),
        grid_spec=pltpu.PrefetchScalarGridSpec(
            num_scalar_prefetch=0,
            grid=(M_pad // tm, V_pad // tn, H // tk),
            in_specs=[
                pl.BlockSpec((tm, tk), lambda i, j, k: (i, k)),
                pl.BlockSpec((tk, tn), lambda i, j, k: (k, j)),
                pl.BlockSpec((1, tn), lambda i, j, k: (0, j)),
            ],
            out_specs=pl.BlockSpec((tm, tn), lambda i, j, k: (i, j)),
            scratch_shapes=[pltpu.VMEM((tm, tn), jnp.float32)],
        ),
        compiler_params=pltpu.CompilerParams(
            dimension_semantics=("parallel", "parallel", "arbitrary"),
            vmem_limit_bytes=32 * 1024 * 1024),
    )(h_p, w_p, b_p)
    return out[:M, :V]


# ---------------------------------------------------------------------------
# Wrapper
# ---------------------------------------------------------------------------
def lstm_mult_att_decoder(y, encoder_outputs, h0, c0, params):
    """Pallas forward. Returns logits [B, T_dec, V]."""
    emb = params["embedding"]              # [V, E] (row 0 = padding, zeros)
    E = emb.shape[1]
    wa_T = params["Wa"].T                  # [H, H]   (for q = h @ Wa^T)
    W_ih = params["W_ih"]                  # [4H, E+H]
    wih_emb_T = W_ih[:, :E].T              # [E, 4H]
    wih_ctx_T = W_ih[:, E:].T              # [H, 4H]
    whh_T = params["W_hh"].T               # [H, 4H]
    b = (params["b_ih"] + params["b_hh"])[None, :]   # [1, 4H]
    wfc_T = params["W_fc"].T               # [H, V]
    bfc = params["b_fc"][None, :]          # [1, V]

    B, T_dec = y.shape
    _, T_enc, H = encoder_outputs.shape
    V = wfc_T.shape[1]

    # embedding lookup (XLA glue) + stage time-major for the sequential grid
    y_embed_tm = jnp.transpose(jnp.take(emb, y, axis=0), (1, 0, 2))  # [T_dec, B, E]

    full = lambda shape: pl.BlockSpec(shape, lambda t: (0,) * len(shape))

    # ---- stage 1: sequential decoder loop, emits hidden states [T_dec, B, H] ----
    hs_tm = pl.pallas_call(
        _decoder_step_kernel,
        out_shape=jax.ShapeDtypeStruct((T_dec, B, H), jnp.float32),
        grid_spec=pltpu.PrefetchScalarGridSpec(
            num_scalar_prefetch=0,
            grid=(T_dec,),
            in_specs=[
                pl.BlockSpec((pl.Squeezed(), B, E), lambda t: (t, 0, 0)),  # y_embed[t]
                full((B, T_enc, H)),          # encoder_outputs (loop-invariant)
                full((H, H)),                 # Wa^T
                full((E, 4 * H)),             # W_ih (embedding part)^T
                full((H, 4 * H)),             # W_ih (context part)^T
                full((H, 4 * H)),             # W_hh^T
                full((1, 4 * H)),             # b_ih + b_hh
                full((B, H)),                 # h0
                full((B, H)),                 # c0
            ],
            out_specs=pl.BlockSpec((pl.Squeezed(), B, H), lambda t: (t, 0, 0)),
            scratch_shapes=[
                pltpu.VMEM((B, H), jnp.float32),   # h carry
                pltpu.VMEM((B, H), jnp.float32),   # c carry
            ],
        ),
        compiler_params=pltpu.CompilerParams(
            dimension_semantics=("arbitrary",),
            vmem_limit_bytes=32 * 1024 * 1024),
    )(y_embed_tm, encoder_outputs, wa_T, wih_emb_T, wih_ctx_T, whh_T, b, h0, c0)

    # ---- stage 2: batched output projection over all T_dec*B rows ----
    logits_flat = _output_projection(hs_tm.reshape(T_dec * B, H), wfc_T, bfc)
    return jnp.transpose(logits_flat.reshape(T_dec, B, V), (1, 0, 2))   # [B, T_dec, V]


# ---------------------------------------------------------------------------
# Pure-JAX reference (mirrors the PyTorch forward)
# ---------------------------------------------------------------------------
def reference(y, encoder_outputs, h0, c0, params):
    emb = params["embedding"]
    wa = params["Wa"]
    wih_T = params["W_ih"].T
    whh_T = params["W_hh"].T
    b = params["b_ih"] + params["b_hh"]
    wfc_T = params["W_fc"].T
    bfc = params["b_fc"]

    H = h0.shape[1]
    y_embed = jnp.take(emb, y, axis=0)
    h, c = h0, c0
    outs = []
    for t in range(y.shape[1]):
        proj = encoder_outputs @ wa
        scores = jnp.sum(h[:, None, :] * proj, axis=2)
        aw = jax.nn.softmax(scores, axis=1)
        context = jnp.sum(encoder_outputs * aw[:, :, None], axis=1)
        x = jnp.concatenate([y_embed[:, t, :], context], axis=1)
        gates = x @ wih_T + h @ whh_T + b
        i_g = jax.nn.sigmoid(gates[:, 0 * H:1 * H])
        f_g = jax.nn.sigmoid(gates[:, 1 * H:2 * H])
        g_g = jnp.tanh(gates[:, 2 * H:3 * H])
        o_g = jax.nn.sigmoid(gates[:, 3 * H:4 * H])
        c = f_g * c + i_g * g_g
        h = o_g * jnp.tanh(c)
        outs.append(h @ wfc_T + bfc)
    return jnp.stack(outs, axis=1)


if __name__ == "__main__":
    # small, forward-consistent shapes
    B, T_dec, T_enc = 2, 4, 8
    H, E, V = 32, 32, 16          # hidden_size, embedding_dim, output_size

    key = jax.random.PRNGKey(0)
    ks = jax.random.split(key, 12)

    emb = jax.random.normal(ks[0], (V, E), jnp.float32) * 0.1
    emb = emb.at[0].set(0.0)      # padding_idx=0
    params = {
        "embedding": emb,
        "Wa":   jax.random.normal(ks[1], (H, H), jnp.float32) * 0.1,
        "W_ih": jax.random.normal(ks[2], (4 * H, E + H), jnp.float32) * 0.1,
        "W_hh": jax.random.normal(ks[3], (4 * H, H), jnp.float32) * 0.1,
        "b_ih": jax.random.normal(ks[4], (4 * H,), jnp.float32) * 0.1,
        "b_hh": jax.random.normal(ks[5], (4 * H,), jnp.float32) * 0.1,
        "W_fc": jax.random.normal(ks[6], (V, H), jnp.float32) * 0.1,
        "b_fc": jax.random.normal(ks[7], (V,), jnp.float32) * 0.1,
    }

    y = jax.random.randint(ks[8], (B, T_dec), 0, V, dtype=jnp.int32)
    encoder_outputs = jax.random.normal(ks[9], (B, T_enc, H), jnp.float32)
    h0 = jax.random.normal(ks[10], (B, H), jnp.float32)
    c0 = jax.random.normal(ks[11], (B, H), jnp.float32)

    out = jax.block_until_ready(
        lstm_mult_att_decoder(y, encoder_outputs, h0, c0, params))
    ref = jax.block_until_ready(
        reference(y, encoder_outputs, h0, c0, params))

    assert out.shape == (B, T_dec, V), out.shape
    # tolerance slightly relaxed: the algebraic attention rewrite (h@Wa^T vs
    # enc@Wa) and the split LSTM matmul change fp summation order (~1e-6 drift).
    assert jnp.allclose(out, ref, atol=1e-4, rtol=1e-4), \
        float(jnp.max(jnp.abs(out - ref)))
    print("KERNEL_OK")
</pallas_src>

<mosaic_0001>
module attributes {stable_mosaic.version = 11 : i64} {
  func.func @_decoder_step_kernel(%arg0: i32, %arg1: memref<1x2x32xf32, #tpu.memory_space<vmem>>, %arg2: memref<2x8x32xf32, #tpu.memory_space<vmem>>, %arg3: memref<32x32xf32, #tpu.memory_space<vmem>>, %arg4: memref<32x128xf32, #tpu.memory_space<vmem>>, %arg5: memref<32x128xf32, #tpu.memory_space<vmem>>, %arg6: memref<32x128xf32, #tpu.memory_space<vmem>>, %arg7: memref<1x128xf32, #tpu.memory_space<vmem>>, %arg8: memref<2x32xf32, #tpu.memory_space<vmem>>, %arg9: memref<2x32xf32, #tpu.memory_space<vmem>>, %arg10: memref<1x2x32xf32, #tpu.memory_space<vmem>>, %arg11: memref<2x32xf32, #tpu.memory_space<vmem>>, %arg12: memref<2x32xf32, #tpu.memory_space<vmem>>) attributes {dimension_semantics = [#tpu.dimension_semantics<arbitrary>], iteration_bounds = array<i64: 4>, scalar_prefetch = 0 : i64, scratch_operands = 2 : i64, tpu.core_type = #tpu.core_type<tc>, window_params = [{transform_indices = @transform_0, window_bounds = array<i64: 1, 2, 32>}, {pipeline_mode = #tpu.pipeline_mode<synchronous>, transform_indices = @transform_1, window_bounds = array<i64: 2, 8, 32>}, {pipeline_mode = #tpu.pipeline_mode<synchronous>, transform_indices = @transform_2, window_bounds = array<i64: 32, 32>}, {pipeline_mode = #tpu.pipeline_mode<synchronous>, transform_indices = @transform_3, window_bounds = array<i64: 32, 128>}, {pipeline_mode = #tpu.pipeline_mode<synchronous>, transform_indices = @transform_4, window_bounds = array<i64: 32, 128>}, {pipeline_mode = #tpu.pipeline_mode<synchronous>, transform_indices = @transform_5, window_bounds = array<i64: 32, 128>}, {pipeline_mode = #tpu.pipeline_mode<synchronous>, transform_indices = @transform_6, window_bounds = array<i64: 1, 128>}, {pipeline_mode = #tpu.pipeline_mode<synchronous>, transform_indices = @transform_7, window_bounds = array<i64: 2, 32>}, {pipeline_mode = #tpu.pipeline_mode<synchronous>, transform_indices = @transform_8, window_bounds = array<i64: 2, 32>}, {transform_indices = @transform_9, window_bounds = array<i64: 1, 2, 32>}]} {
    %c0_i32 = arith.constant 0 : i32
    %0 = arith.cmpi eq, %arg0, %c0_i32 : i32
    %1 = arith.extui %0 : i1 to i32
    %c0_i32_0 = arith.constant 0 : i32
    %2 = arith.cmpi ne, %1, %c0_i32_0 : i32
    scf.if %2 {
      %c0_37 = arith.constant 0 : index
      %c0_38 = arith.constant 0 : index
      %65 = vector.load %arg8[%c0_37, %c0_38] : memref<2x32xf32, #tpu.memory_space<vmem>>, vector<2x32xf32>
      %c0_39 = arith.constant 0 : index
      %c0_40 = arith.constant 0 : index
      %66 = vector.load %arg11[%c0_39, %c0_40] : memref<2x32xf32, #tpu.memory_space<vmem>>, vector<2x32xf32>
      tpu.vector_store %arg11[%c0_39, %c0_40], %65 {strides = array<i32>} : memref<2x32xf32, #tpu.memory_space<vmem>>, vector<2x32xf32>,
      %c0_41 = arith.constant 0 : index
      %c0_42 = arith.constant 0 : index
      %67 = vector.load %arg9[%c0_41, %c0_42] : memref<2x32xf32, #tpu.memory_space<vmem>>, vector<2x32xf32>
      %c0_43 = arith.constant 0 : index
      %c0_44 = arith.constant 0 : index
      %68 = vector.load %arg12[%c0_43, %c0_44] : memref<2x32xf32, #tpu.memory_space<vmem>>, vector<2x32xf32>
      tpu.vector_store %arg12[%c0_43, %c0_44], %67 {strides = array<i32>} : memref<2x32xf32, #tpu.memory_space<vmem>>, vector<2x32xf32>,
    } else {
    }
    %c0 = arith.constant 0 : index
    %c0_1 = arith.constant 0 : index
    %3 = vector.load %arg11[%c0, %c0_1] : memref<2x32xf32, #tpu.memory_space<vmem>>, vector<2x32xf32>
    %c0_2 = arith.constant 0 : index
    %c0_3 = arith.constant 0 : index
    %4 = vector.load %arg12[%c0_2, %c0_3] : memref<2x32xf32, #tpu.memory_space<vmem>>, vector<2x32xf32>
    %c0_4 = arith.constant 0 : index
    %c0_5 = arith.constant 0 : index
    %c0_6 = arith.constant 0 : index
    %5 = vector.load %arg2[%c0_4, %c0_5, %c0_6] : memref<2x8x32xf32, #tpu.memory_space<vmem>>, vector<2x8x32xf32>
    %c0_7 = arith.constant 0 : index
    %c0_8 = arith.constant 0 : index
    %6 = vector.load %arg3[%c0_7, %c0_8] : memref<32x32xf32, #tpu.memory_space<vmem>>, vector<32x32xf32>
    %cst = arith.constant dense<0.000000e+00> : vector<2x32xf32>
    %7 = tpu.matmul %3, %6, %cst {dimension_numbers = #tpu.dot_dimension_numbers<[1], [0], [0], [1], [0, 0, 1, 1], [], []>} : vector<2x32xf32>, vector<32x32xf32>, vector<2x32xf32> -> vector<2x32xf32>
    %8 = vector.shape_cast %7 : vector<2x32xf32> to vector<2x1x32xf32>
    "tpu.trace_start"() <{level = 10 : i32, message = "bsh,bth->bst"}> : () -> ()
    %cst_9 = arith.constant dense<0.000000e+00> : vector<2x1x8xf32>
    %9 = tpu.matmul %8, %5, %cst_9 {dimension_numbers = #tpu.dot_dimension_numbers<[2], [2], [1], [1], [0, 0, 0, 1, 1, 1], [0], [0]>} : vector<2x1x32xf32>, vector<2x8x32xf32>, vector<2x1x8xf32> -> vector<2x1x8xf32>
    "tpu.trace_stop"() : () -> ()
    %cst_10 = arith.constant dense<0xFF800000> : vector<2x1xf32>
    %10 = vector.multi_reduction <maximumf>, %9, %cst_10 [2] : vector<2x1x8xf32> to vector<2x1xf32>
    %11 = vector.shape_cast %10 : vector<2x1xf32> to vector<2x1x1xf32>
    %12 = vector.broadcast %11 : vector<2x1x1xf32> to vector<2x1x8xf32>
    %13 = arith.subf %9, %12 : vector<2x1x8xf32>
    %14 = math.exp %13 : vector<2x1x8xf32>
    %cst_11 = arith.constant dense<0.000000e+00> : vector<2x1xf32>
    %15 = vector.multi_reduction <add>, %14, %cst_11 [2] : vector<2x1x8xf32> to vector<2x1xf32>
    %16 = vector.shape_cast %15 : vector<2x1xf32> to vector<2x1x1xf32>
    %17 = tpu.reciprocal %16 : vector<2x1x1xf32> -> vector<2x1x1xf32>
    %18 = vector.broadcast %17 : vector<2x1x1xf32> to vector<2x1x8xf32>
    %19 = arith.mulf %14, %18 : vector<2x1x8xf32>
    "tpu.trace_start"() <{level = 10 : i32, message = "bst,bth->bsh"}> : () -> ()
    %cst_12 = arith.constant dense<0.000000e+00> : vector<2x1x32xf32>
    %20 = tpu.matmul %19, %5, %cst_12 {dimension_numbers = #tpu.dot_dimension_numbers<[2], [1], [1], [2], [0, 0, 0, 1, 1, 2], [0], [0]>} : vector<2x1x8xf32>, vector<2x8x32xf32>, vector<2x1x32xf32> -> vector<2x1x32xf32>
    "tpu.trace_stop"() : () -> ()
    %21 = vector.shape_cast %20 : vector<2x1x32xf32> to vector<2x32xf32>
    %c0_13 = arith.constant 0 : index
    %c0_14 = arith.constant 0 : index
    %c0_15 = arith.constant 0 : index
    %22 = vector.load %arg1[%c0_13, %c0_14, %c0_15] : memref<1x2x32xf32, #tpu.memory_space<vmem>>, vector<1x2x32xf32>
    %23 = vector.shape_cast %22 : vector<1x2x32xf32> to vector<2x32xf32>
    %c0_16 = arith.constant 0 : index
    %c0_17 = arith.constant 0 : index
    %24 = vector.load %arg4[%c0_16, %c0_17] : memref<32x128xf32, #tpu.memory_space<vmem>>, vector<32x128xf32>
    %cst_18 = arith.constant dense<0.000000e+00> : vector<2x128xf32>
    %25 = tpu.matmul %23, %24, %cst_18 {dimension_numbers = #tpu.dot_dimension_numbers<[1], [0], [0], [1], [0, 0, 1, 1], [], []>} : vector<2x32xf32>, vector<32x128xf32>, vector<2x128xf32> -> vector<2x128xf32>
    %c0_19 = arith.constant 0 : index
    %c0_20 = arith.constant 0 : index
    %26 = vector.load %arg5[%c0_19, %c0_20] : memref<32x128xf32, #tpu.memory_space<vmem>>, vector<32x128xf32>
    %cst_21 = arith.constant dense<0.000000e+00> : vector<2x128xf32>
    %27 = tpu.matmul %21, %26, %cst_21 {dimension_numbers = #tpu.dot_dimension_numbers<[1], [0], [0], [1], [0, 0, 1, 1], [], []>} : vector<2x32xf32>, vector<32x128xf32>, vector<2x128xf32> -> vector<2x128xf32>
    %28 = arith.addf %25, %27 : vector<2x128xf32>
    %c0_22 = arith.constant 0 : index
    %c0_23 = arith.constant 0 : index
    %29 = vector.load %arg6[%c0_22, %c0_23] : memref<32x128xf32, #tpu.memory_space<vmem>>, vector<32x128xf32>
    %cst_24 = arith.constant dense<0.000000e+00> : vector<2x128xf32>
    %30 = tpu.matmul %3, %29, %cst_24 {dimension_numbers = #tpu.dot_dimension_numbers<[1], [0], [0], [1], [0, 0, 1, 1], [], []>} : vector<2x32xf32>, vector<32x128xf32>, vector<2x128xf32> -> vector<2x128xf32>
    %31 = arith.addf %28, %30 : vector<2x128xf32>
    %c0_25 = arith.constant 0 : index
    %c0_26 = arith.constant 0 : index
    %32 = vector.load %arg7[%c0_25, %c0_26] : memref<1x128xf32, #tpu.memory_space<vmem>>, vector<1x128xf32>
    %33 = vector.broadcast %32 : vector<1x128xf32> to vector<2x128xf32>
    %34 = arith.addf %31, %33 : vector<2x128xf32>
    %35 = vector.extract_strided_slice %34 {offsets = [0, 0], sizes = [2, 32], strides = [1, 1]} : vector<2x128xf32> to vector<2x32xf32>
    %36 = arith.negf %35 : vector<2x32xf32>
    %37 = math.exp %36 : vector<2x32xf32>
    %cst_27 = arith.constant 1.000000e+00 : f32
    %38 = vector.broadcast %cst_27 : f32 to vector<2x32xf32>
    %39 = arith.addf %38, %37 : vector<2x32xf32>
    %40 = arith.divf %38, %39 : vector<2x32xf32>
    %41 = vector.extract_strided_slice %34 {offsets = [0, 32], sizes = [2, 32], strides = [1, 1]} : vector<2x128xf32> to vector<2x32xf32>
    %42 = arith.negf %41 : vector<2x32xf32>
    %43 = math.exp %42 : vector<2x32xf32>
    %cst_28 = arith.constant 1.000000e+00 : f32
    %44 = vector.broadcast %cst_28 : f32 to vector<2x32xf32>
    %45 = arith.addf %44, %43 : vector<2x32xf32>
    %46 = arith.divf %44, %45 : vector<2x32xf32>
    %47 = vector.extract_strided_slice %34 {offsets = [0, 64], sizes = [2, 32], strides = [1, 1]} : vector<2x128xf32> to vector<2x32xf32>
    %48 = math.tanh %47 : vector<2x32xf32>
    %49 = vector.extract_strided_slice %34 {offsets = [0, 96], sizes = [2, 32], strides = [1, 1]} : vector<2x128xf32> to vector<2x32xf32>
    %50 = arith.negf %49 : vector<2x32xf32>
    %51 = math.exp %50 : vector<2x32xf32>
    %cst_29 = arith.constant 1.000000e+00 : f32
    %52 = vector.broadcast %cst_29 : f32 to vector<2x32xf32>
    %53 = arith.addf %52, %51 : vector<2x32xf32>
    %54 = arith.divf %52, %53 : vector<2x32xf32>
    %55 = arith.mulf %46, %4 : vector<2x32xf32>
    %56 = arith.mulf %40, %48 : vector<2x32xf32>
    %57 = arith.addf %55, %56 : vector<2x32xf32>
    %58 = math.tanh %57 : vector<2x32xf32>
    %59 = arith.mulf %54, %58 : vector<2x32xf32>
    %c0_30 = arith.constant 0 : index
    %c0_31 = arith.constant 0 : index
    %60 = vector.load %arg11[%c0_30, %c0_31] : memref<2x32xf32, #tpu.memory_space<vmem>>, vector<2x32xf32>
    tpu.vector_store %arg11[%c0_30, %c0_31], %59 {strides = array<i32>} : memref<2x32xf32, #tpu.memory_space<vmem>>, vector<2x32xf32>,
    %c0_32 = arith.constant 0 : index
    %c0_33 = arith.constant 0 : index
    %61 = vector.load %arg12[%c0_32, %c0_33] : memref<2x32xf32, #tpu.memory_space<vmem>>, vector<2x32xf32>
    tpu.vector_store %arg12[%c0_32, %c0_33], %57 {strides = array<i32>} : memref<2x32xf32, #tpu.memory_space<vmem>>, vector<2x32xf32>,
    %c0_34 = arith.constant 0 : index
    %c0_35 = arith.constant 0 : index
    %c0_36 = arith.constant 0 : index
    %62 = vector.load %arg10[%c0_34, %c0_35, %c0_36] : memref<1x2x32xf32, #tpu.memory_space<vmem>>, vector<1x2x32xf32>
    %63 = vector.shape_cast %62 : vector<1x2x32xf32> to vector<2x32xf32>
    %64 = vector.shape_cast %59 : vector<2x32xf32> to vector<1x2x32xf32>
    tpu.vector_store %arg10[%c0_34, %c0_35, %c0_36], %64 {strides = array<i32>} : memref<1x2x32xf32, #tpu.memory_space<vmem>>, vector<1x2x32xf32>,
    return
  }
  func.func @transform_0(%arg0: i32) -> (i32, i32, i32) {
    %c0_i32 = arith.constant 0 : i32
    %c0_i32_0 = arith.constant 0 : i32
    %c0_i32_1 = arith.constant 0 : i32
    return %arg0, %c0_i32, %c0_i32_0 : i32, i32, i32
  }
  func.func @transform_1(%arg0: i32) -> (i32, i32, i32) {
    %c0_i32 = arith.constant 0 : i32
    %c0_i32_0 = arith.constant 0 : i32
    %c0_i32_1 = arith.constant 0 : i32
    %c0_i32_2 = arith.constant 0 : i32
    return %c0_i32, %c0_i32_0, %c0_i32_1 : i32, i32, i32
  }
  func.func @transform_2(%arg0: i32) -> (i32, i32) {
    %c0_i32 = arith.constant 0 : i32
    %c0_i32_0 = arith.constant 0 : i32
    %c0_i32_1 = arith.constant 0 : i32
    return %c0_i32, %c0_i32_0 : i32, i32
  }
  func.func @transform_3(%arg0: i32) -> (i32, i32) {
    %c0_i32 = arith.constant 0 : i32
    %c0_i32_0 = arith.constant 0 : i32
    %c0_i32_1 = arith.constant 0 : i32
    return %c0_i32, %c0_i32_0 : i32, i32
  }
  func.func @transform_4(%arg0: i32) -> (i32, i32) {
    %c0_i32 = arith.constant 0 : i32
    %c0_i32_0 = arith.constant 0 : i32
    %c0_i32_1 = arith.constant 0 : i32
    return %c0_i32, %c0_i32_0 : i32, i32
  }
  func.func @transform_5(%arg0: i32) -> (i32, i32) {
    %c0_i32 = arith.constant 0 : i32
    %c0_i32_0 = arith.constant 0 : i32
    %c0_i32_1 = arith.constant 0 : i32
    return %c0_i32, %c0_i32_0 : i32, i32
  }
  func.func @transform_6(%arg0: i32) -> (i32, i32) {
    %c0_i32 = arith.constant 0 : i32
    %c0_i32_0 = arith.constant 0 : i32
    %c0_i32_1 = arith.constant 0 : i32
    return %c0_i32, %c0_i32_0 : i32, i32
  }
  func.func @transform_7(%arg0: i32) -> (i32, i32) {
    %c0_i32 = arith.constant 0 : i32
    %c0_i32_0 = arith.constant 0 : i32
    %c0_i32_1 = arith.constant 0 : i32
    return %c0_i32, %c0_i32_0 : i32, i32
  }
  func.func @transform_8(%arg0: i32) -> (i32, i32) {
    %c0_i32 = arith.constant 0 : i32
    %c0_i32_0 = arith.constant 0 : i32
    %c0_i32_1 = arith.constant 0 : i32
    return %c0_i32, %c0_i32_0 : i32, i32
  }
  func.func @transform_9(%arg0: i32) -> (i32, i32, i32) {
    %c0_i32 = arith.constant 0 : i32
    %c0_i32_0 = arith.constant 0 : i32
    %c0_i32_1 = arith.constant 0 : i32
    return %arg0, %c0_i32, %c0_i32_0 : i32, i32, i32
  }
}

</mosaic_0001>

<bundles_post_ra>
// kernel: tpu_custom_call.1
= control target key start
LH: loop header
LB: loop body
LE: loop exit
PB: predicated region body
PF: predicated region fallthrough
CT: control target
= control target key end

     0   :  { %s2125_s0 = inlined_call_operand.hbm [shape: f32[4,2,32], index: 0, kind: input, shape index: {}]   ;;  %s2126_s1 = inlined_call_operand.hbm [shape: f32[2,8,32], index: 1, kind: input, shape index: {}]   ;;  %s2127_s2 = inlined_call_operand.hbm [shape: f32[32,32], index: 2, kind: input, shape index: {}]   ;;  %s2128_s3 = inlined_call_operand.hbm [shape: f32[32,128], index: 3, kind: input, shape index: {}]   ;;  %s2129_s4 = inlined_call_operand.hbm [shape: f32[32,128], index: 4, kind: input, shape index: {}]   ;;  %s2130_s5 = inlined_call_operand.hbm [shape: f32[32,128], index: 5, kind: input, shape index: {}]   ;;  %s2131_s6 = inlined_call_operand.vmem [shape: f32[1,128], index: 6, kind: input, shape index: {}]   ;;  %s2132_s7 = inlined_call_operand.vmem [shape: f32[2,32], index: 7, kind: input, shape index: {}]   ;;  %s2133_s8 = inlined_call_operand.vmem [shape: f32[2,32], index: 8, kind: input, shape index: {}]   ;;  %s2134_s9 = inlined_call_operand.hbm [shape: f32[4,2,32], index: 9, kind: output, shape index: {}]  }
   0x1   :  { %2139 = sst [smem:[#allocation21_spill]] %s2126_s1 }
   0x2   :  { %2140 = sst [smem:[#allocation22_spill]] %s2127_s2 }
   0x3   :  { %2141 = sst [smem:[#allocation23_spill]] %s2128_s3 }
   0x4   :  { %2142 = sst [smem:[#allocation24_spill]] %s2129_s4 }
   0x5   :  { %14 = vsyncpa [#allocation5], 0 }
   0x6   :  { %16 = vsyncpa [#allocation5 + $0x1], 0 }
   0x7   :  { %17 = vsyncpa [#allocation8], 0 }
   0x8   :  { %18 = vsyncpa [#allocation11], 0 }
   0x9   :  { %19 = vsyncpa [#allocation14], 0 }
   0xa   :  { %20 = vsyncpa [#allocation6], 0 }
   0xb   :  { %22 = vsyncpa [#allocation6 + $0x1], 0  ;;  %s1818_s30 = smov 0   ;;  %s1820_s10 = smov 0  }
   0xc   :  { %s1822_s11 = smov 0   ;;  %s1824_s12 = smov 0  }
   0xd LB: > { %s1753_s13 = smov [#allocation7]   ;;  %s1839_s15 = sadd.s32 4294967295, %s1751_s12   ;;  %s1751_s12 = sphi %s1824_s12, %s2168_s12   ;;  %s1747_s11 = sphi %s1822_s11, %s2167_s11   ;;  %s1743_s10 = sphi %s1820_s10, %s2166_s10   ;;  %s1739_s30 = sphi %s1818_s30, %s2165_s30  }
   0xe   : > { %s265_s14 = sshll.u32 %s1753_s13, 4  ;;  %p1270_p0 = scmp.ge.s32.totalorder %s1751_s12, 1  ;;  %s266_s14 = int_to_ptr.vmem [resolvable:$true] %s265_s14 }
   0xf   : > { %p2135_p1 = scmp.eq.s32.totalorder %s1839_s15, 0  ;;  %p253_p2 = scmp.lt.s32.totalorder %s1751_s12, 5 }
  0x10   : > { %s1754_s17 = smov [#allocation10]   ;;  %s1755_s20 = smov [#allocation9]  }
  0x11   : > { %p1845_p4 = pnand %p1270_p0, %p253_p2  ;;  %s291_s18 = sshll.u32 %s1754_s17, 4  ;;  %s1857_s18 = int_to_ptr.vmem [resolvable:$true] %s291_s18 }
  0x12   : > { %s278_s21 = sshll.u32 %s1755_s20, 4  ;;  %s1528_s23 = scalar_lea.vmem %s266_s14, 256  ;;  %s1859_s21 = int_to_ptr.vmem [resolvable:$true] %s278_s21 }
  0x13   : > { %s2143_s16 = scalar_select %p1845_p4, 1, 0 }
  0x14   : > { %p1420_p5 = pneg %p1845_p4  ;;  %p1529_p8 = scmp.ne.s32.totalorder %s266_s14, %s1528_s23 }
  0x15   : > { %p1536_p11 = scmp.lt.s32.totalorder %s266_s14, %s266_s14  ;;  %p1537_p12 = scmp.lt.s32.totalorder %s1528_s23, %s1528_s23 }
  0x16   : > { %p1853_p6 = pnand %p1420_p5, %p2135_p1 }
  0x17   : > { %p1538_p13 = por %p1537_p12, %p1536_p11 }
  0x18   : > { %p1863_p7 = pneg %p1853_p6 }
  0x1a   : > { %p1531_p9 = pnand %p1529_p8, %p1863_p7 }
  0x1c   : > { %p1532_p10 = pneg %p1531_p9 }
  0x1e   : > { %p1539_p0 = pnand %p1538_p13, %p1532_p10 }
  0x20   : > { %1542 = shalt.err (!%p1539_p0)
}
  0x21   : > { %s1756_s24 = smov 128   ;;  %s1757_s25 = smov 8  }
  0x22   : > { %s2146_s1 = sld [smem:[#allocation21_spill]]  ;;  %s1554_s28 = scalar_lea.vmem %s1857_s18, 512 }
  0x23   : > { %p1555_p2 = scmp.ne.s32.totalorder %s1857_s18, %s1554_s28  ;;  %p1562_p9 = scmp.lt.s32.totalorder %s1857_s18, %s1857_s18 }
  0x24   : > { %p1563_p10 = scmp.lt.s32.totalorder %s1554_s28, %s1554_s28 }
  0x25   : > { %p1557_p5 = pnand %p1555_p2, %p1863_p7 }
  0x26   : > { %p1564_p11 = por %p1563_p10, %p1562_p9 }
  0x27   : > { %p1558_p8 = pneg %p1557_p5 }
  0x28   : > { %1423 = dma.hbm_to_vmem [thread:$0]  (!%p1853_p6), %s2146_s1, 256, %s266_s14, [#allocation8], %s1756_s24, %s1756_s24, %s1757_s25  }
  0x29   : > { %p1565_p12 = pnand %p1564_p11, %p1558_p8 }
  0x2b   : > { %1568 = shalt.err (!%p1565_p12)
}
  0x2c   : > { %s2147_s3 = sld [smem:[#allocation23_spill]]  ;;  %s1580_s14 = scalar_lea.vmem %s1859_s21, 512 }
  0x2d   : > { %p1581_p13 = scmp.ne.s32.totalorder %s1859_s21, %s1580_s14  ;;  %p1588_p5 = scmp.lt.s32.totalorder %s1859_s21, %s1859_s21 }
  0x2e   : > { %p1589_p8 = scmp.lt.s32.totalorder %s1580_s14, %s1580_s14 }
  0x2f   : > { %p1583_p0 = pnand %p1581_p13, %p1863_p7 }
  0x30   : > { %p1590_p9 = por %p1589_p8, %p1588_p5 }
  0x31   : > { %p1584_p2 = pneg %p1583_p0 }
  0x32   : > { %1429 = dma.hbm_to_vmem [thread:$0]  (!%p1853_p6), %s2147_s3, 512, %s1857_s18, [#allocation11], %s1756_s24, %s1756_s24, %s1757_s25  }
  0x33   : > { %p1591_p10 = pnand %p1590_p9, %p1584_p2 }
  0x35   : > { %1594 = shalt.err (!%p1591_p10)
}
  0x36   : > { %s2148_s2 = sld [smem:[#allocation22_spill]]  ;;  %s1758_s18 = smov [#allocation12]  }
  0x37   : > { %s304_s23 = sshll.u32 %s1758_s18, 4  ;;  %s1759_s26 = smov [#allocation13]   ;;  %s305_s23 = int_to_ptr.vmem [resolvable:$true] %s304_s23 }
  0x38   : > { %s317_s27 = sshll.u32 %s1759_s26, 4  ;;  %s1606_s28 = scalar_lea.vmem %s305_s23, 512  ;;  %s318_s27 = int_to_ptr.vmem [resolvable:$true] %s317_s27 }
  0x39   : > { %p1607_p11 = scmp.ne.s32.totalorder %s305_s23, %s1606_s28  ;;  %p1614_p0 = scmp.lt.s32.totalorder %s305_s23, %s305_s23 }
  0x3a   : > { %p1615_p2 = scmp.lt.s32.totalorder %s1606_s28, %s1606_s28 }
  0x3b   : > { %p1609_p12 = pnand %p1607_p11, %p1863_p7 }
  0x3c   : > { %1426 = dma.hbm_to_vmem [thread:$0]  (!%p1853_p6), %s2148_s2, 512, %s1859_s21, [#allocation8], %s1756_s24, %s1756_s24, %s1757_s25  }
  0x3d   : > { %p1610_p13 = pneg %p1609_p12  ;;  %p1616_p5 = por %p1615_p2, %p1614_p0 }
  0x3f   : > { %p1617_p8 = pnand %p1616_p5, %p1610_p13 }
  0x41   : > { %1620 = shalt.err (!%p1617_p8)
}
  0x42   : > { %s2149_s4 = sld [smem:[#allocation24_spill]]  ;;  %s1632_s13 = scalar_lea.vmem %s318_s27, 512 }
  0x43   : > { %p1633_p9 = scmp.ne.s32.totalorder %s318_s27, %s1632_s13  ;;  %p1640_p12 = scmp.lt.s32.totalorder %s318_s27, %s318_s27 }
  0x44   : > { %p1641_p0 = scmp.lt.s32.totalorder %s1632_s13, %s1632_s13 }
  0x45   : > { %p1635_p10 = pnand %p1633_p9, %p1863_p7 }
  0x46   : > { %p1642_p13 = por %p1641_p0, %p1640_p12 }
  0x47   : > { %p1636_p11 = pneg %p1635_p10 }
  0x48   : > { %1432 = dma.hbm_to_vmem [thread:$0]  (!%p1853_p6), %s2149_s4, 512, %s305_s23, [#allocation11], %s1756_s24, %s1756_s24, %s1757_s25  }
  0x49   : > { %p1643_p2 = pnand %p1642_p13, %p1636_p11 }
  0x4b   : > { %1646 = shalt.err (!%p1643_p2)
}
  0x4c   : > { %1435 = dma.hbm_to_vmem [thread:$0]  (!%p1853_p6), %s2130_s5, 512, %s318_s27, [#allocation14], %s1756_s24, %s1756_s24, %s1757_s25  }
  0x4d   : > { %s1269_s19 = sadd.s32 4294967294, %s1751_s12   ;;  %s1929_s22 = sadd.s32 1, %s1751_s12  }
  0x4e   : > { %s35_s20 = sadd.s32 1, %s1747_s11  ;;  %s32_s18 = ssub.s32 %s1751_s12, %s1929_s22 }
  0x4f   : > { %p42_p7 = scmp.ne.s32.totalorder %s1747_s11, %s1743_s10  ;;  %p33_p5 = scmp.eq.s32.totalorder %s32_s18, 0 }
  0x50   : > { %p43_p8 = scmp.eq.s32.totalorder %s1751_s12, 0  ;;  %p48_p9 = scmp.ne.s32.totalorder %s1743_s10, %s1739_s30 }
  0x51   : > { %p240_p10 = scmp.eq.s32.totalorder %s1839_s15, 3  ;;  %p246_p0 = scmp.eq.s32.totalorder %s1269_s19, 3 }
  0x52   : > { %s1941_s23 = scalar_select %p33_p5, %s1747_s11, %s35_s20  }
  0x53   : > { %p44_p11 = por %p43_p8, %p42_p7  ;;  %p1945_p12 = por %p2135_p1, %p48_p9 }
  0x54   : > { %p1949_p6 = por %p240_p10, %p42_p7  ;;  %p1449_p13 = scmp.lt.s32.totalorder %s1751_s12, 4 }
  0x55   : > { %s2150_s26 = scalar_select %p1945_p12, 1, 0 }
  0x56   : > { %s2151_s24 = scalar_select %p1949_p6, 1, 0 }
  0x57   : > { %s340_s25 = sand.u32 1, %s1747_s11   ;;  %p1955_p2 = por %p246_p0, %p48_p9 }
  0x58   : > { %s1277_s28 = sshll.u32 %s340_s25, 1  ;;  %s1278_s21 = sshll.u32 %s1751_s12, 5 }
  0x59   : > { %s2152_s27 = scalar_select %p1955_p2, 1, 0 }
  0x5a   : > { %s1963_s14 = scalar_lea.hbm %s2125_s0, %s1278_s21  ;;  %s344_s17 = scalar_lea.vmem [#allocation4], %s1277_s28 }
  0x5b   : > { %s351_s20 = sshll.u32 %s344_s17, 4  ;;  %p1965_p7 = pnand %p1449_p13, %p44_p11  ;;  %s352_s20 = int_to_ptr.vmem [resolvable:$true] %s351_s20 }
  0x5c   : > { %s341_s18 = scalar_lea.sflag [#allocation5], %s340_s25  ;;  %s1647_s1 = scalar_lea.hbm %s1963_s14, 32 }
  0x5d   : > { %p1648_p5 = scmp.ne.s32.totalorder %s1963_s14, %s1647_s1  ;;  %p1649_p8 = pneg %p1965_p7 }
  0x5e   : > { %s1652_s13 = scalar_lea.hbm %s2125_s0, 128  ;;  %p1653_p11 = scmp.lt.s32.totalorder %s1963_s14, %s2125_s0 }
  0x5f   : > { %p1650_p9 = pnand %p1649_p8, %p1648_p5  ;;  %p1654_p0 = scmp.lt.s32.totalorder %s1652_s13, %s1647_s1 }
  0x61   : > { %p1651_p10 = pneg %p1650_p9  ;;  %p1655_p13 = por %p1654_p0, %p1653_p11 }
  0x63   : > { %p1656_p3 = pnand %p1655_p13, %p1651_p10 }
  0x65   : > { %1659 = shalt.err (!%p1656_p3)
}
  0x66   : > { %s1660_s17 = scalar_lea.vmem %s352_s20, 32  ;;  %s1760_s25 = smov [#allocation4]  }
  0x67   : > { %p1661_p1 = scmp.ne.s32.totalorder %s352_s20, %s1660_s17  ;;  %s1665_s3 = sshll.u32 %s1760_s25, 4  ;;  %s1666_s3 = int_to_ptr.vmem [resolvable:$false] %s1665_s3 }
  0x68   : > { %s1667_s4 = scalar_lea.vmem %s1666_s3, 64  ;;  %p1668_p5 = scmp.lt.s32.totalorder %s352_s20, %s1666_s3 }
  0x69   : > { %p1663_p2 = pnand %p1661_p1, %p1649_p8  ;;  %p1669_p9 = scmp.lt.s32.totalorder %s1667_s4, %s1660_s17 }
  0x6b   : > { %p1664_p6 = pneg %p1663_p2  ;;  %p1670_p12 = por %p1669_p9, %p1668_p5 }
  0x6d   : > { %p1671_p4 = pnand %p1670_p12, %p1664_p6 }
  0x6f   : > { %1674 = shalt.err (!%p1671_p4)
}
  0x70   : > { %1439 = dma.hbm_to_vmem [thread:$0]  (!%p1965_p7), %s1963_s14, 32, %s352_s20, %s341_s18  }
  0x71   : > { %p2154_p10 = scmp.ne.s32.totalorder %s2143_s16, 0 }
  0x72   : > { %s1986_s1 = sand.u32 (!%p2154_p10), 1, %s1743_s10   ;;  %p2155_p1 = scmp.ne.s32.totalorder (!%p2154_p10), %s2150_s26, 0 }
  0x73   : > { %360 = sbr.rel (%p2154_p10) target bundleno = 1763 (0x6e3), region = 56  ;;  %s1280_s2 = sshll.u32 (!%p2154_p10), %s1986_s1, 1 }
  0x74   : > { %s363_s21 = scalar_lea.sflag (!%p2154_p10), [#allocation5], %s1986_s1  ;;  %s1990_s3 = scalar_lea.vmem (!%p2154_p10), [#allocation4], %s1280_s2 }
  0x78   : > { %1718 = dma.done.wait (%p2155_p1), %s363_s21, 32  }
  0x79   : > { %1720 = vsyncadd (%p2155_p1), %s363_s21, 4294967264  ;;  %p2156_p3 = scmp.eq.s32.totalorder %s1839_s15, 0 }
  0x7b   : > { %1722 = dma.done.wait (%p2156_p3), [#allocation8], 768   ;;  %p2157_p4 = pmov %p2156_p3 }
  0x7c   : > { %p2158_p12 = pmov %p2156_p3 }
  0x7d   : > { %1724 = vsyncadd (%p2157_p4), [#allocation8], 4294966528 }
  0x7e   : > { %1726 = dma.done.wait (%p2158_p12), [#allocation11], 1024   ;;  %p2159_p6 = pmov %p2156_p3 }
  0x7f   : > { %p2160_p2 = pmov %p2156_p3 }
  0x80   : > { %1728 = vsyncadd (%p2159_p6), [#allocation11], 4294966272 }
  0x81   : > { %1730 = dma.done.wait (%p2160_p2), [#allocation14], 512   ;;  %p2161_p7 = pmov %p2160_p2 }
  0x82   : > { %s2008_s4 = scalar_lea.vmem [#allocation15], %s1280_s2  ;;  %p2162_p8 = scmp.ne.s32.totalorder %s1839_s15, 0 }
  0x83   : > { %1732 = vsyncadd (%p2161_p7), [#allocation14], 4294966784 }
  0x84   : > { %424 = sbr.rel (%p2162_p8) target bundleno = 140 (0x8c), region = 84 }
  0x89   : > { %v425_v0 = vld [vmem:[%s2132_s7] sm:$0x3]  ;;  %vm426_vm0 = vcmask 254976  }
  0x8a   : > { %v428_v1 = vld [vmem:[%s2133_s8] sm:$0x3]  ;;  %427 = vst.msk [vmem:[#allocation2] sm:$0x3] %vm426_vm0, %v425_v0 }
  0x8b   : > { %429 = vst.msk [vmem:[#allocation3] sm:$0x3] %vm426_vm0, %v428_v1 }
  0x8c PF: > { %v437_v2 = vld [vmem:[#allocation9 + $0x18] sm:$0xff]  ;;  %v1761_v3 = vmov 0.0   ;;  %v436_v4 = vld [vmem:[#allocation9 + $0x10] sm:$0xff]  ;;  %vm1762_vm1 = vmmov 0   ;;  %v435_v5 = vld [vmem:[#allocation9 + $0x8] sm:$0xff]  ;;  %vm438_vm2 = vcmask 261120   ;;  %v516_v11 = vlaneseq }
  0x8d   : > { %1332 = vmatprep.subr.mxu0 %v1761_v3  ;;  %1340 = vmatprep.mubr.msk.f32.mxu0 %vm1762_vm1, %v1761_v3  ;;  %v434_v6 = vld [vmem:[#allocation9] sm:$0xff]  ;;  %v432_v8 = vld [vmem:[#allocation7] sm:$0xff]  ;;  %v1763_v9 = vmov 1966171168   ;;  %v433_v20 = vld [vmem:[#allocation7 + $0x8] sm:$0xff]  ;;  %vm685_vm3 = vcmask 57344  }
  0x8e   : > { %1333 = vmatpush3.msra.mxu0 %v437_v2  ;;  %1343 = vmatprep.subr.mxu1 %v1761_v3  ;;  %v514_v10 = vunpack.c.l.s4 %v1763_v9  ;;  %v517_v13 = vshrl.u32 %v516_v11, 7  ;;  %vm708_vm4 = vcmask 64512   ;;  %v863_v44 = vld [vmem:[#allocation12 + $0x18] sm:$0xff]  ;;  %v862_v46 = vld [vmem:[#allocation12 + $0x10] sm:$0xff]  ;;  %v861_v48 = vld [vmem:[#allocation12 + $0x8] sm:$0xff]  ;;  %s1764_s19 = smov 32  }
  0x8f   : > { %1334 = vmatprep.subr.mxu0 %v1761_v3  ;;  %1345 = vmatprep.mubr.msk.f32.mxu1 %vm1762_vm1, %v1761_v3  ;;  %v859_v45 = vld [vmem:[#allocation10 + $0x18] sm:$0xff]  ;;  %v858_v47 = vld [vmem:[#allocation10 + $0x10] sm:$0xff]  ;;  %v857_v49 = vld [vmem:[#allocation10 + $0x8] sm:$0xff]  ;;  %vm867_vm5 = vcmask 1041409   ;;  %s1765_s13 = smov 64   ;;  %s1766_s28 = smov 96  }
  0x90   : > { %1335 = vmatpush3.msra.mxu0 %v436_v4  ;;  %1344 = vmatpush3.xpose.msk.msra.mxu1 %vm438_vm2, %v432_v8  ;;  %v515_v12 = vunpack.c.0.s8 %v514_v10  ;;  %v860_v50 = vld [vmem:[#allocation12] sm:$0xff]  ;;  %v855_v52 = vld [vmem:[%s1990_s3] sm:$0x3]  ;;  %v1017_v59 = vld [vmem:[#allocation13 + $0x18] sm:$0xff]  ;;  %vm1129_vm6 = vcmask 254976   ;;  %s1301_s17 = sshll.u32 %s1839_s15, 5 }
  0x91   : > { %1336 = vmatprep.subr.mxu0 %v1761_v3  ;;  %v2026_v7 = vld [vmem:[#allocation2] sm:$0x3]  ;;  %1348 = vmatprep.subr.mxu1 %v1761_v3  ;;  %v856_v51 = vld [vmem:[#allocation10] sm:$0xff]  ;;  %v1016_v61 = vld [vmem:[#allocation13 + $0x10] sm:$0xff]  ;;  %s1151_s25 = sshll.u32 %s2008_s4, 4  ;;  %s2082_s3 = scalar_lea.hbm %s2134_s9, %s1301_s17  ;;  %s2084_s25 = int_to_ptr.vmem [resolvable:$true] %s1151_s25 }
  0x92   : > { %1337 = vmatpush3.msra.mxu0 %v435_v5  ;;  %v518_v14 = vsub.s32 %v515_v12, %v517_v13  ;;  %v431_v53 = vld [vmem:[#allocation3] sm:$0x3]  ;;  %v1014_v63 = vld [vmem:[#allocation13] sm:$0xff]  ;;  %s1138_s16 = scalar_lea.sflag [#allocation6], %s1986_s1  ;;  %s1675_s26 = scalar_lea.vmem %s2084_s25, 32 }
  0x93   : > { %1338 = vmatprep.subr.mxu0 %v1761_v3  ;;  %v1015_v62 = vld [vmem:[#allocation13 + $0x8] sm:$0xff]  ;;  %p1676_p11 = scmp.ne.s32.totalorder %s2084_s25, %s1675_s26  ;;  %p2163_p0 = scmp.ne.s32.totalorder %s2151_s24, 0 }
  0x94   : > { %1339 = vmatpush3.msra.mxu0 %v434_v6  ;;  %s1767_s15 = smov [#allocation15]  }
  0x95   : > { %1341 = vmatmul.mubr.msk.f32.vlgmr.msra.gmra.mxu0 %vm438_vm2, %v2026_v7  ;;  %1363 = vmatprep.subr.mxu0 %v1761_v3  ;;  %p1677_p13 = pnand %p1676_p11, %p2163_p0  ;;  %s1679_s14 = sshll.u32 %s1767_s15, 4  ;;  %s1680_s14 = int_to_ptr.vmem [resolvable:$false] %s1679_s14 }
  0x96   : > { %1371 = vmatprep.mubr.msk.f32.mxu0 %vm1762_vm1, %v1761_v3  ;;  %1364 = vmatpush3.msra.mxu0 %v863_v44  ;;  %s1681_s20 = scalar_lea.vmem %s1680_s14, 64  ;;  %p1682_p9 = scmp.lt.s32.totalorder %s2084_s25, %s1680_s14 }
  0x97   : > { %1365 = vmatprep.subr.mxu0 %v1761_v3  ;;  %p1678_p5 = pneg %p1677_p13  ;;  %p1683_p10 = scmp.lt.s32.totalorder %s1681_s20, %s1675_s26 }
  0x98   : > { %1366 = vmatpush3.msra.mxu0 %v862_v46 }
  0x99   : > { %1367 = vmatprep.subr.mxu0 %v1761_v3  ;;  %p1684_p1 = por %p1683_p10, %p1682_p9 }
  0x9a   : > { %1368 = vmatpush3.msra.mxu0 %v861_v48 }
  0x9b   : > { %1369 = vmatprep.subr.mxu0 %v1761_v3  ;;  %p1685_p3 = pnand %p1684_p1, %p1678_p5 }
  0x9c   : > { %1370 = vmatpush3.msra.mxu0 %v860_v50 }
  0x9d   : > { %1385 = vmatprep.subr.mxu0 %v1761_v3 }
 0x155   : > { %v508_v15 = vpop.f32.mrf.mxu0 }
 0x156   : > { %v519_v16 = vrot.slane %v508_v15, %v518_v14 }
 0x157   : > { %v1342_v17 = vpop.f32.mrf.mxu0 }
 0x158   : > { %v520_v18 = vcombine.high %v519_v16, %v519_v16  ;;  %v527_v19 = vrot.slane %v519_v16, %v518_v14 }
 0x15a   : > { %1346 = vmatmul.mubr.msk.f32.vlgmr.msra.gmra.mxu1 %vm438_vm2, %v527_v19  ;;  %v534_v21 = vrot.slane %v520_v18, %v518_v14 }
 0x15b   : > { %1349 = vmatpush3.xpose.msk.msra.mxu1 %vm438_vm2, %v433_v20  ;;  %1350 = vmatprep.mubr.msk.f32.mxu1 %vm1762_vm1, %v1761_v3 }
 0x15c   : > { %1353 = vmatprep.subr.mxu1 %v1761_v3 }
 0x15e   : > { %1351 = vmatmul.mubr.msk.f32.vlgmr.msra.gmra.mxu1 %vm438_vm2, %v534_v21 }
 0x15f   : > { %1354 = vmatpush3.msra.mxu1 %v432_v8  ;;  %1355 = vmatprep.mubr.msk.f32.mxu1 %vm1762_vm1, %v1761_v3  ;;  %v1298_v8 = vld [vmem:[%s2131_s6] ss:$0 sm:$0xff] }
 0x160   : > { %1358 = vmatprep.subr.mxu1 %v1761_v3 }
 0x21a   : > { %v606_v22 = vpop.f32.mrf.mxu1 }
 0x21b   : > { %v686_v23 = vsel %vm685_vm3, %v606_v22, -inf }
 0x21c   : > { %687 = vmax.xlane.f32.xlu0 %v686_v23  ;;  %v1347_v24 = vpop.f32.mrf.mxu1 }
 0x21e   : > { %v681_v25 = vpop.f32.mrf.mxu1 }
 0x21f   : > { %v689_v26 = vsel %vm685_vm3, %v681_v25, -inf }
 0x220   : > { %690 = vmax.xlane.f32.xlu0 %v689_v26  ;;  %v1352_v27 = vpop.f32.mrf.mxu1 }
 0x2a5   : > { %v688_v28 = vpop.xlane.xlu0 %687 }
 0x2a6   : > { %v692_v29 = vsub.f32 %v606_v22, %v688_v28 }
 0x2a8   : > { %v694_v30 = vmul.f32 1.442695, %v692_v29 }
 0x2a9   : > { %v691_v31 = vpop.xlane.xlu0 %690 }
 0x2aa   : > { %1501 = vpow2.f32 %v694_v30  ;;  %v693_v32 = vsub.f32 %v681_v25, %v691_v31 }
 0x2ac   : > { %v696_v33 = vmul.f32 1.442695, %v693_v32 }
 0x2ae   : > { %1503 = vpow2.f32 %v696_v33 }
 0x2b7   : > { %v1502_v34 = vpop.eup %1501 }
 0x2b8   : > { %v698_v35 = vsel %vm685_vm3, %v1502_v34, 0.0 }
 0x2b9   : > { %699 = vadd.xlane.f32.xlu1 %v698_v35 }
 0x2bb   : > { %v1504_v36 = vpop.eup %1503 }
 0x2bc   : > { %v701_v37 = vsel %vm685_vm3, %v1504_v36, 0.0 }
 0x2bd   : > { %702 = vadd.xlane.f32.xlu1 %v701_v37 }
 0x2ce   : > { %1105 = vrot.lane.b32.xlu1 %v431_v53, %s1764_s19 }
 0x342   : > { %v700_v38 = vpop.xlane.xlu1 %699 }
 0x343   : > { %1505 = vrcp.f32 %v700_v38 }
 0x346   : > { %v703_v39 = vpop.xlane.xlu1 %702 }
 0x347   : > { %1507 = vrcp.f32 %v703_v39 }
 0x34a   : > { %v1106_v17 = vpop.permute.xlu1 %1105 }
 0x350   : > { %v1506_v40 = vpop.eup %1505 }
 0x351   : > { %v706_v41 = vmul.f32 %v1506_v40, %v1502_v34 }
 0x353   : > { %1356 = vmatmul.mubr.msk.f32.vlgmr.msra.gmra.mxu1 %vm708_vm4, %v706_v41 }
 0x354   : > { %v1508_v42 = vpop.eup %1507  ;;  %1359 = vmatpush3.msra.mxu1 %v433_v20  ;;  %1360 = vmatprep.mubr.msk.f32.mxu1 %vm1762_vm1, %v1761_v3 }
 0x355   : > { %v707_v43 = vmul.f32 %v1508_v42, %v1504_v36  ;;  %1374 = vmatprep.subr.mxu1 %v1761_v3 }
 0x357   : > { %1361 = vmatmul.mubr.msk.f32.vlgmr.msra.gmra.mxu1 %vm708_vm4, %v707_v43 }
 0x358   : > { %1382 = vmatprep.mubr.msk.f32.mxu1 %vm1762_vm1, %v1761_v3  ;;  %1375 = vmatpush3.msra.mxu1 %v859_v45 }
 0x359   : > { %1376 = vmatprep.subr.mxu1 %v1761_v3 }
 0x35a   : > { %1377 = vmatpush3.msra.mxu1 %v858_v47 }
 0x35b   : > { %1378 = vmatprep.subr.mxu1 %v1761_v3 }
 0x35c   : > { %1379 = vmatpush3.msra.mxu1 %v857_v49 }
 0x35d   : > { %1380 = vmatprep.subr.mxu1 %v1761_v3 }
 0x35e   : > { %1381 = vmatpush3.msra.mxu1 %v856_v51 }
 0x35f   : > { %1383 = vmatmul.mubr.msk.f32.vlgmr.msra.gmra.mxu1 %vm438_vm2, %v855_v52 }
 0x413   : > { %v778_v54 = vpop.f32.mrf.mxu1 }
 0x415   : > { %v1357_v55 = vpop.f32.mrf.mxu1 }
 0x417   : > { %v851_v56 = vpop.f32.mrf.mxu1 }
 0x418   : > { %v866_v57 = vrot.slane %v851_v56, 7 }
 0x419   : > { %v1362_v58 = vpop.f32.mrf.mxu1 }
 0x41a   : > { %v868_v60 = vsel %vm867_vm5, %v866_v57, %v778_v54 }
 0x41b   : > { %1372 = vmatmul.mubr.msk.f32.vlgmr.msra.gmra.mxu0 %vm438_vm2, %v868_v60 }
 0x41c   : > { %1386 = vmatpush3.msra.mxu0 %v1017_v59  ;;  %1393 = vmatprep.mubr.msk.f32.mxu0 %vm1762_vm1, %v1761_v3 }
 0x41d   : > { %1387 = vmatprep.subr.mxu0 %v1761_v3 }
 0x41e   : > { %1388 = vmatpush3.msra.mxu0 %v1016_v61 }
 0x41f   : > { %1389 = vmatprep.subr.mxu0 %v1761_v3  ;;  %v1010_v0 = vpop.f32.mrf.mxu1 }
 0x420   : > { %1390 = vmatpush3.msra.mxu0 %v1015_v62 }
 0x421   : > { %1391 = vmatprep.subr.mxu0 %v1761_v3  ;;  %v1384_v1 = vpop.f32.mrf.mxu1 }
 0x422   : > { %1392 = vmatpush3.msra.mxu0 %v1014_v63 }
 0x423   : > { %1394 = vmatmul.mubr.msk.f32.vlgmr.msra.gmra.mxu0 %vm438_vm2, %v2026_v7 }
 0x4db   : > { %v937_v2 = vpop.f32.mrf.mxu0 }
 0x4dc   : > { %v1011_v5 = vadd.f32 %v1010_v0, %v937_v2 }
 0x4dd   : > { %v1373_v4 = vpop.f32.mrf.mxu0 }
 0x4e3   : > { %v1084_v6 = vpop.f32.mrf.mxu0 }
 0x4e4   : > { %v1088_v9 = vadd.f32 %v1084_v6, %v1011_v5 }
 0x4e5   : > { %v1395_v10 = vpop.f32.mrf.mxu0 }
 0x4e6   : > { %v1096_v11 = vadd.f32 %v1298_v8, %v1088_v9 }
 0x4e8   : > { %1509 = vtanh.f32 %v1096_v11  ;;  %v1299_v3 = vmul.f32 -1.442695, %v1096_v11 }
 0x4ea   : > { %1511 = vpow2.f32 %v1299_v3 }
 0x4f5   : > { %v1510_v12 = vpop.eup %1509 }
 0x4f6   : > { %1110 = vrot.lane.b32.xlu0 %v1510_v12, %s1765_s13 }
 0x4f7   : > { %v1512_v7 = vpop.eup %1511 }
 0x4f8   : > { %v1100_v13 = vadd.f32 1.0, %v1512_v7 }
 0x4fa   : > { %1513 = vrcp.f32 %v1100_v13 }
 0x507   : > { %v1514_v14 = vpop.eup %1513 }
 0x508   : > { %v1108_v18 = vmul.f32 %v1514_v14, %v1106_v17 }
 0x568   : > { %v1111_v15 = vpop.permute.xlu0 %1110 }
 0x569   : > { %v1113_v16 = vmul.f32 %v1514_v14, %v1111_v15 }
 0x56b   : > { %1115 = vrot.lane.b32.xlu1 %v1113_v16, %s1764_s19 }
 0x5dd   : > { %v1116_v19 = vpop.permute.xlu1 %1115 }
 0x5de   : > { %v1118_v20 = vadd.f32 %v1116_v19, %v1108_v18 }
 0x5e0   : > { %1515 = vtanh.f32 %v1118_v20 }
 0x5ed   : > { %v1516_v21 = vpop.eup %1515 }
 0x5ee   : > { %1121 = vrot.lane.b32.xlu1 %v1516_v21, %s1765_s13 }
 0x5f2   : > { %1132 = vrot.lane.b32.xlu1 %v1118_v20, %s1766_s28 }
 0x660   : > { %v1122_v22 = vpop.permute.xlu1 %1121 }
 0x661   : > { %v1124_v23 = vmul.f32 %v1514_v14, %v1122_v22 }
 0x663   : > { %1126 = vrot.lane.b32.xlu0 %v1124_v23, %s1764_s19 }
 0x664   : > { %v1133_v24 = vpop.permute.xlu1 %1132 }
 0x665   : > { %1135 = vst.msk [vmem:[#allocation3] sm:$0x3] %vm1129_vm6, %v1133_v24 }
 0x6d5   : > { %v1127_v25 = vpop.permute.xlu0 %1126 }
 0x6d6   : > { %1130 = vst.msk [vmem:[#allocation2] sm:$0x3] %vm1129_vm6, %v1127_v25  ;;  %1136 = vst.msk [vmem:[%s2008_s4] sm:$0x3] %vm1129_vm6, %v1127_v25 }
 0x6d7   : > { %1688 = shalt.err (!%p1685_p3)
}
 0x6d8   : > { %s1689_s4 = scalar_lea.hbm %s2082_s3, 32  ;;  %s1693_s18 = scalar_lea.hbm %s2134_s9, 128 }
 0x6d9   : > { %p1690_p4 = scmp.ne.s32.totalorder %s2082_s3, %s1689_s4  ;;  %p1694_p2 = scmp.lt.s32.totalorder %s2082_s3, %s2134_s9 }
 0x6da   : > { %p1695_p7 = scmp.lt.s32.totalorder %s1693_s18, %s1689_s4 }
 0x6db   : > { %p1691_p12 = pnand %p1690_p4, %p2163_p0 }
 0x6dc   : > { %p1696_p8 = por %p1695_p7, %p1694_p2 }
 0x6dd   : > { %p1692_p6 = pneg %p1691_p12 }
 0x6df   : > { %p1697_p11 = pnand %p1696_p8, %p1692_p6 }
 0x6e1   : > { %1700 = shalt.err (!%p1697_p11)
}
 0x6e2   : > { %1418 = dma.vmem_to_hbm [thread:$0]  (%p2163_p0), %s2084_s25, 32, %s2082_s3, %s1138_s16  }
 0x6e3 PF: > { %p1455_p13 = scmp.ge.s32.totalorder %s1751_s12, 2  ;;  %s1163_s28 = sand.u32 1, %s1739_s30  }
 0x6e4   : > { %p2164_p5 = scmp.ne.s32.totalorder %s2152_s27, 0  ;;  %s1164_s17 = scalar_lea.sflag [#allocation6], %s1163_s28 }
 0x6e6   : > { %p1441_p9 = pnand %p1455_p13, %p2164_p5 }
 0x6e8   : > { %p1442_p10 = pneg %p1441_p9 }
 0x6ea   : > { %1734 = dma.done.wait (%p1442_p10), %s1164_s17, 32  }
 0x6eb   : > { %1736 = vsyncadd (%p1442_p10), %s1164_s17, 4294967264  ;;  %p25_p1 = scmp.ge.s32.totalorder %s1929_s22, 6   ;;  %s2165_s30 = smov %s1743_s10 }
 0x6ec   : > { %s2166_s10 = smov %s1747_s11  ;;  %s2167_s11 = smov %s1941_s23 }
 0x6ed   : > { %s2168_s12 = smov %s1929_s22  ;;  %27 = sbr.rel (!%p25_p1) target bundleno = 13 (0xd), region = 125 }
 0x6f2   :  { %1169 = vsyncpa [#allocation5], 1 }
 0x6f3   :  { %1171 = vsyncpa [#allocation5 + $0x1], 1 }
 0x6f4   :  { %1172 = vsyncpa [#allocation8], 1 }
 0x6f5   :  { %1173 = vsyncpa [#allocation11], 1 }
 0x6f6   :  { %1174 = vsyncpa [#allocation14], 1 }
 0x6f7   :  { %1175 = vsyncpa [#allocation6], 1 }
 0x6f8   :  { %1177 = vsyncpa [#allocation6 + $0x1], 1 }

</bundles_post_ra>
